<compile_context>
chip_gen: v7x
topology: tpu7x:2x2x1
jax: 0.10.0
libtpu: 0.0.40
codegen_flags: <defaults>
</compile_context>

<pallas_src>
import functools
import math

import jax
import jax.numpy as jnp
import numpy as np
from jax.experimental import pallas as pl
from jax.experimental.pallas import tpu as pltpu

_NEG = -1e30


def _round_up(x, m):
    return ((x + m - 1) // m) * m


# -----------------------------------------------------------------------------
# Fused multi-step decoder kernel (one grid step == one decoded token)
# -----------------------------------------------------------------------------
def attn_decoder_seq_kernel(ids_ref,                       # SMEM (T,) token ids
                            emb_tab_ref, hid0_ref, enc_ref,
                            w_fused_ref, attn_b_ref,
                            comb_wc_ref, comb_b_ref,
                            wih_ref, bih_ref, bhh_ref,
                            outw_ref, outb_ref,
                            out_ref,                       # (1, 1, TOT) packed row
                            hid_scr,                       # VMEM (1, H) carry
                            *, H, V, Lpad, Vpad, Hpad):
    t = pl.program_id(0)

    # Initialize the hidden-state carry from the caller's hidden at step 0.
    @pl.when(t == 0)
    def _init():
        hid_scr[...] = hid0_ref[...]

    hid = hid_scr[...]                                               # (1, H)

    # ---- embedding lookup: one-hot MXU GEMV against the resident table ------
    tok = ids_ref[t]
    onehot = (jax.lax.broadcasted_iota(jnp.int32, (1, V), 1) == tok
              ).astype(jnp.float32)                                  # (1, V)
    emb = jnp.dot(onehot, emb_tab_ref[...],
                  preferred_element_type=jnp.float32)                # (1, H)
    # TODO(synk): dropout on `emb` omitted (eval mode).

    # ---- ONE fused matmul for everything fed by [emb | hid] ------------------
    cat = jnp.concatenate([emb, hid], axis=1)                        # (1, 2H)
    proj = jnp.dot(cat, w_fused_ref[...],
                   preferred_element_type=jnp.float32)               # (1, Lpad+4H)

    # ---- attention scores + softmax (lane-dense (1, Lpad), pad bias -1e30) ---
    e = proj[:, :Lpad] + attn_b_ref[...]
    p = jnp.exp(e - jnp.max(e, axis=1, keepdims=True))               # pads -> 0
    aw = p / jnp.sum(p, axis=1, keepdims=True)                       # exact divide

    # ---- context vector: MXU GEMV --------------------------------------------
    ctx = jnp.dot(aw, enc_ref[...], preferred_element_type=jnp.float32)   # (1, H)

    # ---- attn_combine + relu --------------------------------------------------
    x = jnp.maximum(
        proj[:, Lpad:Lpad + H]
        + jnp.dot(ctx, comb_wc_ref[...], preferred_element_type=jnp.float32)
        + comb_b_ref[...], 0.0)                                      # (1, H)

    # ---- GRU cell (packed gates, PyTorch order r|z|n) -------------------------
    gi = jnp.dot(x, wih_ref[...], preferred_element_type=jnp.float32) + bih_ref[...]
    gh = proj[:, Lpad + H:] + bhh_ref[...]                           # (1, 3H)
    rz = jax.nn.sigmoid(gi[:, :2 * H] + gh[:, :2 * H])
    r = rz[:, :H]
    z = rz[:, H:]
    n = jnp.tanh(gi[:, 2 * H:] + r * gh[:, 2 * H:])
    h_new = (1.0 - z) * n + z * hid                                  # (1, H)
    hid_scr[...] = h_new                                             # carry

    # ---- output projection + log_softmax (padded lanes carry -1e30 bias) -----
    logits = (jnp.dot(h_new, outw_ref[...], preferred_element_type=jnp.float32)
              + outb_ref[...])                                       # (1, Vpad)
    s = logits - jnp.max(logits, axis=1, keepdims=True)
    logp = s - jnp.log(jnp.sum(jnp.exp(s), axis=1, keepdims=True))

    # ---- ONE lane-dense packed store: [logp | aw | h_new | 0-pad] -------------
    row = jnp.concatenate(
        [logp, aw, h_new, jnp.zeros((1, Hpad - H), jnp.float32)], axis=1)
    out_ref[0] = row


# -----------------------------------------------------------------------------
# Wrapper: one pallas_call for the whole T-step decode
# -----------------------------------------------------------------------------
def attn_decoder_decode(token_ids, hidden0, encoder_outputs, p):
    """Run T decoder steps (teacher-forced token ids) in one fused kernel.

    Returns (log_probs (T,V), final_hidden (1,1,H), attn_weights (T,L))."""
    H, L, V, Lpad, Vpad, Hpad = p['dims']
    T = int(token_ids.shape[0])
    TOT = Vpad + Lpad + Hpad

    # Pad encoder outputs ONCE (padded rows are zero and receive aw == 0).
    enc_pad = jnp.pad(encoder_outputs, ((0, Lpad - L), (0, 0)))

    kernel = functools.partial(attn_decoder_seq_kernel,
                               H=H, V=V, Lpad=Lpad, Vpad=Vpad, Hpad=Hpad)

    const = lambda t, ids: (0, 0)          # weights / state: resident in VMEM
    grid_spec = pltpu.PrefetchScalarGridSpec(
        num_scalar_prefetch=1,             # token ids -> SMEM
        grid=(T,),
        in_specs=[
            pl.BlockSpec((V, H), const),                 # embedding table
            pl.BlockSpec((1, H), const),                 # initial hidden
            pl.BlockSpec((Lpad, H), const),              # padded encoder outputs
            pl.BlockSpec((2 * H, Lpad + 4 * H), const),  # fused [attn|comb|whh] W
            pl.BlockSpec((1, Lpad), const),              # attn bias (-1e30 pad)
            pl.BlockSpec((H, H), const),                 # comb (ctx half)
            pl.BlockSpec((1, H), const),                 # comb bias
            pl.BlockSpec((H, 3 * H), const),             # GRU W_ih^T
            pl.BlockSpec((1, 3 * H), const),             # b_ih
            pl.BlockSpec((1, 3 * H), const),             # b_hh
            pl.BlockSpec((H, Vpad), const),              # out W^T (zero pad)
            pl.BlockSpec((1, Vpad), const),              # out bias (-1e30 pad)
        ],
        out_specs=pl.BlockSpec((1, 1, TOT), lambda t, ids: (t, 0, 0)),
        scratch_shapes=[pltpu.VMEM((1, H), jnp.float32)],   # hidden carry
    )

    out = pl.pallas_call(
        kernel,
        grid_spec=grid_spec,
        out_shape=jax.ShapeDtypeStruct((T, 1, TOT), jnp.float32),
        compiler_params=pltpu.CompilerParams(
            dimension_semantics=("arbitrary",)),         # time is sequential
    )(token_ids.astype(jnp.int32), p['embedding'], hidden0.reshape(1, H),
      enc_pad, p['w_fused'], p['attn_b'], p['comb_wc'], p['comb_b'],
      p['wih'], p['bih'], p['bhh'], p['outw'], p['outb'])

    out = out[:, 0, :]                                   # (T, TOT)
    logp = out[:, :V]
    aw = out[:, Vpad:Vpad + L]
    h_last = out[-1, Vpad + Lpad:Vpad + Lpad + H].reshape(1, 1, H)
    return logp, h_last, aw


def attn_decoder_forward(input_idx, hidden, encoder_outputs, params):
    """Single-step API matching AttnDecoderRNN.forward semantics."""
    ids = jnp.asarray([input_idx], jnp.int32)
    logp, h_new, aw = attn_decoder_decode(ids, hidden, encoder_outputs, params)
    return logp[:1], h_new, aw[:1]


# -----------------------------------------------------------------------------
# Parameter init (torch-default-style) + packing into kernel layout
# -----------------------------------------------------------------------------
def init_raw_params(key, H, V, L):
    ks = iter(jax.random.split(key, 16))

    def lin(out_f, in_f):
        bound = 1.0 / math.sqrt(in_f)
        W = jax.random.uniform(next(ks), (out_f, in_f), jnp.float32, -bound, bound)
        b = jax.random.uniform(next(ks), (out_f,), jnp.float32, -bound, bound)
        return W, b

    raw = {}
    raw['embedding'] = jax.random.normal(next(ks), (V, H), jnp.float32)
    raw['attn_W'], raw['attn_b'] = lin(L, 2 * H)       # Linear(2H -> max_length)
    raw['comb_W'], raw['comb_b'] = lin(H, 2 * H)       # Linear(2H -> H)
    gb = 1.0 / math.sqrt(H)
    raw['wih'] = jax.random.uniform(next(ks), (3 * H, H), jnp.float32, -gb, gb)
    raw['whh'] = jax.random.uniform(next(ks), (3 * H, H), jnp.float32, -gb, gb)
    raw['bih'] = jax.random.uniform(next(ks), (3 * H,), jnp.float32, -gb, gb)
    raw['bhh'] = jax.random.uniform(next(ks), (3 * H,), jnp.float32, -gb, gb)
    raw['outW'], raw['outb'] = lin(V, H)               # Linear(H -> V)
    return raw


def pack_params(raw, H, L, V):
    Lpad = max(128, _round_up(L, 128))
    Vpad = max(128, _round_up(V, 128))
    Hpad = max(128, _round_up(H, 128))

    def pad_cols(x, target, value=0.0):
        extra = target - x.shape[1]
        if extra == 0:
            return x
        return jnp.concatenate(
            [x, jnp.full((x.shape[0], extra), value, x.dtype)], axis=1)

    attn_we = raw['attn_W'].T[:H]          # (H, L)   embedded half
    attn_wh = raw['attn_W'].T[H:]          # (H, L)   hidden half
    comb_we = raw['comb_W'].T[:H]          # (H, H)   embedded half
    comb_wc = raw['comb_W'].T[H:]          # (H, H)   context half

    zHH = jnp.zeros((H, H), jnp.float32)
    zH3H = jnp.zeros((H, 3 * H), jnp.float32)
    # Fused weight consumed by cat[emb | hid]:
    #   cols [0:Lpad)        -> attention logits
    #   cols [Lpad:Lpad+H)   -> attn_combine, embedded half
    #   cols [Lpad+H:Lpad+4H)-> GRU hidden gates (whh^T), hidden rows only
    top = jnp.concatenate([pad_cols(attn_we, Lpad), comb_we, zH3H], axis=1)
    bot = jnp.concatenate([pad_cols(attn_wh, Lpad), zHH, raw['whh'].T], axis=1)

    p = {}
    p['embedding'] = raw['embedding']
    p['w_fused'] = jnp.concatenate([top, bot], axis=0)                 # (2H, Lpad+4H)
    p['attn_b'] = pad_cols(raw['attn_b'].reshape(1, L), Lpad, _NEG)    # (1, Lpad)
    p['comb_wc'] = comb_wc                                             # (H, H)
    p['comb_b'] = raw['comb_b'].reshape(1, H)
    p['wih'] = raw['wih'].T                                            # (H, 3H)
    p['bih'] = raw['bih'].reshape(1, 3 * H)
    p['bhh'] = raw['bhh'].reshape(1, 3 * H)
    p['outw'] = pad_cols(raw['outW'].T, Vpad)                          # (H, Vpad)
    p['outb'] = pad_cols(raw['outb'].reshape(1, V), Vpad, _NEG)        # (1, Vpad)
    p['dims'] = (H, L, V, Lpad, Vpad, Hpad)
    return p


# -----------------------------------------------------------------------------
# Pure-JAX reference (torch-faithful single-step math) for correctness checks
# -----------------------------------------------------------------------------
def reference_step(input_idx, hidden, encoder_outputs, raw):
    hi = jax.lax.Precision.HIGHEST
    H = hidden.shape[-1]
    emb = raw['embedding'][input_idx].reshape(1, H)
    hid = hidden.reshape(1, H)
    cat = jnp.concatenate([emb, hid], axis=1)
    attn_logits = jnp.dot(cat, raw['attn_W'].T, precision=hi) + raw['attn_b']
    aw = jax.nn.softmax(attn_logits, axis=1)
    ctx = jnp.dot(aw, encoder_outputs, precision=hi)
    comb = (jnp.dot(jnp.concatenate([emb, ctx], axis=1), raw['comb_W'].T,
                    precision=hi) + raw['comb_b'])
    x = jnp.maximum(comb, 0.0)
    gi = jnp.dot(x, raw['wih'].T, precision=hi) + raw['bih']
    gh = jnp.dot(hid, raw['whh'].T, precision=hi) + raw['bhh']
    r = jax.nn.sigmoid(gi[:, :H] + gh[:, :H])
    z = jax.nn.sigmoid(gi[:, H:2 * H] + gh[:, H:2 * H])
    n = jnp.tanh(gi[:, 2 * H:] + r * gh[:, 2 * H:])
    h_new = (1.0 - z) * n + z * hid
    logits = jnp.dot(h_new, raw['outW'].T, precision=hi) + raw['outb']
    logp = jax.nn.log_softmax(logits, axis=1)
    return logp, h_new.reshape(1, 1, H), aw


def reference_decode(token_ids, hidden, encoder_outputs, raw):
    logps, aws = [], []
    h = hidden
    for tok in np.asarray(token_ids):
        logp, h, aw = reference_step(int(tok), h, encoder_outputs, raw)
        logps.append(logp)
        aws.append(aw)
    return jnp.concatenate(logps, 0), h, jnp.concatenate(aws, 0)


# -----------------------------------------------------------------------------
if __name__ == "__main__":
    H = 32          # hidden_size / embedding dim
    V = 64          # output_size (vocab)
    L = 8           # max_length == encoder timesteps
    T = 6           # number of decode steps run inside ONE kernel launch

    key = jax.random.PRNGKey(0)
    kp, ke, kt = jax.random.split(key, 3)

    raw = init_raw_params(kp, H, V, L)
    params = pack_params(raw, H, L, V)

    token_ids = jax.random.randint(kt, (T,), 0, V, dtype=jnp.int32)
    hidden0 = jnp.zeros((1, 1, H), jnp.float32)                      # initHidden()
    encoder_outputs = jax.random.normal(ke, (L, H), jnp.float32)     # (max_length, H)

    # Full T-step decode in a single fused pallas_call.
    logp, hidden_out, attn_weights = attn_decoder_decode(
        token_ids, hidden0, encoder_outputs, params)
    jax.block_until_ready((logp, hidden_out, attn_weights))

    # Reference: iterate the torch-faithful single-step math T times.
    logp_ref, hidden_ref, aw_ref = reference_decode(
        token_ids, hidden0, encoder_outputs, raw)

    # sanity / correctness checks
    assert logp.shape == (T, V)
    assert hidden_out.shape == (1, 1, H)
    assert attn_weights.shape == (T, L)
    assert np.isfinite(np.asarray(logp)).all()
    np.testing.assert_allclose(np.asarray(jnp.sum(jnp.exp(logp), axis=1)),
                               np.ones(T), atol=1e-3)
    np.testing.assert_allclose(np.asarray(jnp.sum(attn_weights, axis=1)),
                               np.ones(T), atol=1e-3)
    np.testing.assert_allclose(np.asarray(attn_weights), np.asarray(aw_ref),
                               atol=1e-2, rtol=1e-2)
    np.testing.assert_allclose(np.asarray(hidden_out), np.asarray(hidden_ref),
                               atol=2e-2, rtol=2e-2)
    np.testing.assert_allclose(np.asarray(logp), np.asarray(logp_ref),
                               atol=2e-2, rtol=2e-2)

    # Single-step API (matches the module's forward signature) still works.
    logp1, h1, aw1 = attn_decoder_forward(3, hidden0, encoder_outputs, params)
    jax.block_until_ready((logp1, h1, aw1))
    assert logp1.shape == (1, V) and h1.shape == (1, 1, H) and aw1.shape == (1, L)

    print("KERNEL_OK")
</pallas_src>

<mosaic_0001>
module attributes {stable_mosaic.version = 11 : i64} {
  func.func @attn_decoder_seq_kernel(%arg0: i32, %arg1: memref<6xi32, #tpu.memory_space<smem>>, %arg2: memref<64x32xf32, #tpu.memory_space<vmem>>, %arg3: memref<1x32xf32, #tpu.memory_space<vmem>>, %arg4: memref<128x32xf32, #tpu.memory_space<vmem>>, %arg5: memref<64x256xf32, #tpu.memory_space<vmem>>, %arg6: memref<1x128xf32, #tpu.memory_space<vmem>>, %arg7: memref<32x32xf32, #tpu.memory_space<vmem>>, %arg8: memref<1x32xf32, #tpu.memory_space<vmem>>, %arg9: memref<32x96xf32, #tpu.memory_space<vmem>>, %arg10: memref<1x96xf32, #tpu.memory_space<vmem>>, %arg11: memref<1x96xf32, #tpu.memory_space<vmem>>, %arg12: memref<32x128xf32, #tpu.memory_space<vmem>>, %arg13: memref<1x128xf32, #tpu.memory_space<vmem>>, %arg14: memref<1x1x384xf32, #tpu.memory_space<vmem>>, %arg15: memref<1x32xf32, #tpu.memory_space<vmem>>) attributes {dimension_semantics = [#tpu.dimension_semantics<arbitrary>], iteration_bounds = array<i64: 6>, scalar_prefetch = 1 : i64, scratch_operands = 1 : i64, tpu.core_type = #tpu.core_type<tc>, window_params = [{pipeline_mode = #tpu.pipeline_mode<synchronous>, transform_indices = @transform_0, window_bounds = array<i64: 64, 32>}, {pipeline_mode = #tpu.pipeline_mode<synchronous>, transform_indices = @transform_1, window_bounds = array<i64: 1, 32>}, {pipeline_mode = #tpu.pipeline_mode<synchronous>, transform_indices = @transform_2, window_bounds = array<i64: 128, 32>}, {pipeline_mode = #tpu.pipeline_mode<synchronous>, transform_indices = @transform_3, window_bounds = array<i64: 64, 256>}, {pipeline_mode = #tpu.pipeline_mode<synchronous>, transform_indices = @transform_4, window_bounds = array<i64: 1, 128>}, {pipeline_mode = #tpu.pipeline_mode<synchronous>, transform_indices = @transform_5, window_bounds = array<i64: 32, 32>}, {pipeline_mode = #tpu.pipeline_mode<synchronous>, transform_indices = @transform_6, window_bounds = array<i64: 1, 32>}, {pipeline_mode = #tpu.pipeline_mode<synchronous>, transform_indices = @transform_7, window_bounds = array<i64: 32, 96>}, {pipeline_mode = #tpu.pipeline_mode<synchronous>, transform_indices = @transform_8, window_bounds = array<i64: 1, 96>}, {pipeline_mode = #tpu.pipeline_mode<synchronous>, transform_indices = @transform_9, window_bounds = array<i64: 1, 96>}, {pipeline_mode = #tpu.pipeline_mode<synchronous>, transform_indices = @transform_10, window_bounds = array<i64: 32, 128>}, {pipeline_mode = #tpu.pipeline_mode<synchronous>, transform_indices = @transform_11, window_bounds = array<i64: 1, 128>}, {transform_indices = @transform_12, window_bounds = array<i64: 1, 1, 384>}]} {
    %c0_i32 = arith.constant 0 : i32
    %0 = arith.cmpi eq, %arg0, %c0_i32 : i32
    %1 = arith.extui %0 : i1 to i32
    %c0_i32_0 = arith.constant 0 : i32
    %2 = arith.cmpi ne, %1, %c0_i32_0 : i32
    scf.if %2 {
      %c0_42 = arith.constant 0 : index
      %c0_43 = arith.constant 0 : index
      %85 = vector.load %arg3[%c0_42, %c0_43] : memref<1x32xf32, #tpu.memory_space<vmem>>, vector<1x32xf32>
      %c0_44 = arith.constant 0 : index
      %c0_45 = arith.constant 0 : index
      %86 = vector.load %arg15[%c0_44, %c0_45] : memref<1x32xf32, #tpu.memory_space<vmem>>, vector<1x32xf32>
      tpu.vector_store %arg15[%c0_44, %c0_45], %85 {strides = array<i32>} : memref<1x32xf32, #tpu.memory_space<vmem>>, vector<1x32xf32>,
    } else {
    }
    %c0 = arith.constant 0 : index
    %c0_1 = arith.constant 0 : index
    %3 = vector.load %arg15[%c0, %c0_1] : memref<1x32xf32, #tpu.memory_space<vmem>>, vector<1x32xf32>
    %4 = arith.index_cast %arg0 : i32 to index
    %5 = memref.load %arg1[%4] : memref<6xi32, #tpu.memory_space<smem>>
    %6 = tpu.iota {dimensions = array<i32: 1>} : vector<1x64xi32>
    %7 = vector.broadcast %5 : i32 to vector<1x64xi32>
    %8 = arith.cmpi eq, %6, %7 : vector<1x64xi32>
    %9 = arith.extui %8 : vector<1x64xi1> to vector<1x64xi32>
    %10 = arith.sitofp %9 : vector<1x64xi32> to vector<1x64xf32>
    %c0_2 = arith.constant 0 : index
    %c0_3 = arith.constant 0 : index
    %11 = vector.load %arg2[%c0_2, %c0_3] : memref<64x32xf32, #tpu.memory_space<vmem>>, vector<64x32xf32>
    %cst = arith.constant dense<0.000000e+00> : vector<1x32xf32>
    %12 = tpu.matmul %10, %11, %cst {dimension_numbers = #tpu.dot_dimension_numbers<[1], [0], [0], [1], [0, 0, 1, 1], [], []>} : vector<1x64xf32>, vector<64x32xf32>, vector<1x32xf32> -> vector<1x32xf32>
    %13 = tpu.concatenate %12, %3 in 1 : vector<1x32xf32>, vector<1x32xf32> -> vector<1x64xf32>
    %c0_4 = arith.constant 0 : index
    %c0_5 = arith.constant 0 : index
    %14 = vector.load %arg5[%c0_4, %c0_5] : memref<64x256xf32, #tpu.memory_space<vmem>>, vector<64x256xf32>
    %cst_6 = arith.constant dense<0.000000e+00> : vector<1x256xf32>
    %15 = tpu.matmul %13, %14, %cst_6 {dimension_numbers = #tpu.dot_dimension_numbers<[1], [0], [0], [1], [0, 0, 1, 1], [], []>} : vector<1x64xf32>, vector<64x256xf32>, vector<1x256xf32> -> vector<1x256xf32>
    %16 = vector.extract_strided_slice %15 {offsets = [0, 0], sizes = [1, 128], strides = [1, 1]} : vector<1x256xf32> to vector<1x128xf32>
    %c0_7 = arith.constant 0 : index
    %c0_8 = arith.constant 0 : index
    %17 = vector.load %arg6[%c0_7, %c0_8] : memref<1x128xf32, #tpu.memory_space<vmem>>, vector<1x128xf32>
    %18 = arith.addf %16, %17 : vector<1x128xf32>
    %cst_9 = arith.constant dense<0xFF800000> : vector<1xf32>
    %19 = vector.multi_reduction <maximumf>, %18, %cst_9 [1] : vector<1x128xf32> to vector<1xf32>
    %20 = vector.shape_cast %19 : vector<1xf32> to vector<1x1xf32>
    %21 = vector.broadcast %20 : vector<1x1xf32> to vector<1x128xf32>
    %22 = arith.subf %18, %21 : vector<1x128xf32>
    %23 = math.exp %22 : vector<1x128xf32>
    %cst_10 = arith.constant dense<0.000000e+00> : vector<1xf32>
    %24 = vector.multi_reduction <add>, %23, %cst_10 [1] : vector<1x128xf32> to vector<1xf32>
    %25 = vector.shape_cast %24 : vector<1xf32> to vector<1x1xf32>
    %26 = vector.broadcast %25 : vector<1x1xf32> to vector<1x128xf32>
    %27 = arith.divf %23, %26 : vector<1x128xf32>
    %c0_11 = arith.constant 0 : index
    %c0_12 = arith.constant 0 : index
    %28 = vector.load %arg4[%c0_11, %c0_12] : memref<128x32xf32, #tpu.memory_space<vmem>>, vector<128x32xf32>
    %cst_13 = arith.constant dense<0.000000e+00> : vector<1x32xf32>
    %29 = tpu.matmul %27, %28, %cst_13 {dimension_numbers = #tpu.dot_dimension_numbers<[1], [0], [0], [1], [0, 0, 1, 1], [], []>} : vector<1x128xf32>, vector<128x32xf32>, vector<1x32xf32> -> vector<1x32xf32>
    %30 = vector.extract_strided_slice %15 {offsets = [0, 128], sizes = [1, 32], strides = [1, 1]} : vector<1x256xf32> to vector<1x32xf32>
    %c0_14 = arith.constant 0 : index
    %c0_15 = arith.constant 0 : index
    %31 = vector.load %arg7[%c0_14, %c0_15] : memref<32x32xf32, #tpu.memory_space<vmem>>, vector<32x32xf32>
    %cst_16 = arith.constant dense<0.000000e+00> : vector<1x32xf32>
    %32 = tpu.matmul %29, %31, %cst_16 {dimension_numbers = #tpu.dot_dimension_numbers<[1], [0], [0], [1], [0, 0, 1, 1], [], []>} : vector<1x32xf32>, vector<32x32xf32>, vector<1x32xf32> -> vector<1x32xf32>
    %33 = arith.addf %30, %32 : vector<1x32xf32>
    %c0_17 = arith.constant 0 : index
    %c0_18 = arith.constant 0 : index
    %34 = vector.load %arg8[%c0_17, %c0_18] : memref<1x32xf32, #tpu.memory_space<vmem>>, vector<1x32xf32>
    %35 = arith.addf %33, %34 : vector<1x32xf32>
    %cst_19 = arith.constant 0.000000e+00 : f32
    %36 = vector.broadcast %cst_19 : f32 to vector<1x32xf32>
    %37 = arith.maximumf %35, %36 : vector<1x32xf32>
    %c0_20 = arith.constant 0 : index
    %c0_21 = arith.constant 0 : index
    %38 = vector.load %arg9[%c0_20, %c0_21] : memref<32x96xf32, #tpu.memory_space<vmem>>, vector<32x96xf32>
    %cst_22 = arith.constant dense<0.000000e+00> : vector<1x96xf32>
    %39 = tpu.matmul %37, %38, %cst_22 {dimension_numbers = #tpu.dot_dimension_numbers<[1], [0], [0], [1], [0, 0, 1, 1], [], []>} : vector<1x32xf32>, vector<32x96xf32>, vector<1x96xf32> -> vector<1x96xf32>
    %c0_23 = arith.constant 0 : index
    %c0_24 = arith.constant 0 : index
    %40 = vector.load %arg10[%c0_23, %c0_24] : memref<1x96xf32, #tpu.memory_space<vmem>>, vector<1x96xf32>
    %41 = arith.addf %39, %40 : vector<1x96xf32>
    %42 = vector.extract_strided_slice %15 {offsets = [0, 160], sizes = [1, 96], strides = [1, 1]} : vector<1x256xf32> to vector<1x96xf32>
    %c0_25 = arith.constant 0 : index
    %c0_26 = arith.constant 0 : index
    %43 = vector.load %arg11[%c0_25, %c0_26] : memref<1x96xf32, #tpu.memory_space<vmem>>, vector<1x96xf32>
    %44 = arith.addf %42, %43 : vector<1x96xf32>
    %45 = vector.extract_strided_slice %41 {offsets = [0, 0], sizes = [1, 64], strides = [1, 1]} : vector<1x96xf32> to vector<1x64xf32>
    %46 = vector.extract_strided_slice %44 {offsets = [0, 0], sizes = [1, 64], strides = [1, 1]} : vector<1x96xf32> to vector<1x64xf32>
    %47 = arith.addf %45, %46 : vector<1x64xf32>
    %48 = arith.negf %47 : vector<1x64xf32>
    %49 = math.exp %48 : vector<1x64xf32>
    %cst_27 = arith.constant 1.000000e+00 : f32
    %50 = vector.broadcast %cst_27 : f32 to vector<1x64xf32>
    %51 = arith.addf %50, %49 : vector<1x64xf32>
    %52 = arith.divf %50, %51 : vector<1x64xf32>
    %53 = vector.extract_strided_slice %52 {offsets = [0, 0], sizes = [1, 32], strides = [1, 1]} : vector<1x64xf32> to vector<1x32xf32>
    %54 = vector.extract_strided_slice %52 {offsets = [0, 32], sizes = [1, 32], strides = [1, 1]} : vector<1x64xf32> to vector<1x32xf32>
    %55 = vector.extract_strided_slice %41 {offsets = [0, 64], sizes = [1, 32], strides = [1, 1]} : vector<1x96xf32> to vector<1x32xf32>
    %56 = vector.extract_strided_slice %44 {offsets = [0, 64], sizes = [1, 32], strides = [1, 1]} : vector<1x96xf32> to vector<1x32xf32>
    %57 = arith.mulf %53, %56 : vector<1x32xf32>
    %58 = arith.addf %55, %57 : vector<1x32xf32>
    %59 = math.tanh %58 : vector<1x32xf32>
    %cst_28 = arith.constant 1.000000e+00 : f32
    %60 = vector.broadcast %cst_28 : f32 to vector<1x32xf32>
    %61 = arith.subf %60, %54 : vector<1x32xf32>
    %62 = arith.mulf %61, %59 : vector<1x32xf32>
    %63 = arith.mulf %54, %3 : vector<1x32xf32>
    %64 = arith.addf %62, %63 : vector<1x32xf32>
    %c0_29 = arith.constant 0 : index
    %c0_30 = arith.constant 0 : index
    %65 = vector.load %arg15[%c0_29, %c0_30] : memref<1x32xf32, #tpu.memory_space<vmem>>, vector<1x32xf32>
    tpu.vector_store %arg15[%c0_29, %c0_30], %64 {strides = array<i32>} : memref<1x32xf32, #tpu.memory_space<vmem>>, vector<1x32xf32>,
    %c0_31 = arith.constant 0 : index
    %c0_32 = arith.constant 0 : index
    %66 = vector.load %arg12[%c0_31, %c0_32] : memref<32x128xf32, #tpu.memory_space<vmem>>, vector<32x128xf32>
    %cst_33 = arith.constant dense<0.000000e+00> : vector<1x128xf32>
    %67 = tpu.matmul %64, %66, %cst_33 {dimension_numbers = #tpu.dot_dimension_numbers<[1], [0], [0], [1], [0, 0, 1, 1], [], []>} : vector<1x32xf32>, vector<32x128xf32>, vector<1x128xf32> -> vector<1x128xf32>
    %c0_34 = arith.constant 0 : index
    %c0_35 = arith.constant 0 : index
    %68 = vector.load %arg13[%c0_34, %c0_35] : memref<1x128xf32, #tpu.memory_space<vmem>>, vector<1x128xf32>
    %69 = arith.addf %67, %68 : vector<1x128xf32>
    %cst_36 = arith.constant dense<0xFF800000> : vector<1xf32>
    %70 = vector.multi_reduction <maximumf>, %69, %cst_36 [1] : vector<1x128xf32> to vector<1xf32>
    %71 = vector.shape_cast %70 : vector<1xf32> to vector<1x1xf32>
    %72 = vector.broadcast %71 : vector<1x1xf32> to vector<1x128xf32>
    %73 = arith.subf %69, %72 : vector<1x128xf32>
    %74 = math.exp %73 : vector<1x128xf32>
    %cst_37 = arith.constant dense<0.000000e+00> : vector<1xf32>
    %75 = vector.multi_reduction <add>, %74, %cst_37 [1] : vector<1x128xf32> to vector<1xf32>
    %76 = vector.shape_cast %75 : vector<1xf32> to vector<1x1xf32>
    %77 = math.log %76 : vector<1x1xf32>
    %78 = vector.broadcast %77 : vector<1x1xf32> to vector<1x128xf32>
    %79 = arith.subf %73, %78 : vector<1x128xf32>
    %cst_38 = arith.constant 0.000000e+00 : f32
    %80 = vector.broadcast %cst_38 : f32 to vector<1x96xf32>
    %81 = tpu.concatenate %79, %27, %64, %80 in 1 : vector<1x128xf32>, vector<1x128xf32>, vector<1x32xf32>, vector<1x96xf32> -> vector<1x384xf32>
    %c0_39 = arith.constant 0 : index
    %c0_40 = arith.constant 0 : index
    %c0_41 = arith.constant 0 : index
    %82 = vector.load %arg14[%c0_39, %c0_40, %c0_41] : memref<1x1x384xf32, #tpu.memory_space<vmem>>, vector<1x1x384xf32>
    %83 = vector.shape_cast %82 : vector<1x1x384xf32> to vector<1x384xf32>
    %84 = vector.shape_cast %81 : vector<1x384xf32> to vector<1x1x384xf32>
    tpu.vector_store %arg14[%c0_39, %c0_40, %c0_41], %84 {strides = array<i32>} : memref<1x1x384xf32, #tpu.memory_space<vmem>>, vector<1x1x384xf32>,
    return
  }
  func.func @transform_0(%arg0: i32, %arg1: memref<6xi32, #tpu.memory_space<smem>>) -> (i32, i32) {
    %c0_i32 = arith.constant 0 : i32
    %c0_i32_0 = arith.constant 0 : i32
    %c0_i32_1 = arith.constant 0 : i32
    return %c0_i32, %c0_i32_0 : i32, i32
  }
  func.func @transform_1(%arg0: i32, %arg1: memref<6xi32, #tpu.memory_space<smem>>) -> (i32, i32) {
    %c0_i32 = arith.constant 0 : i32
    %c0_i32_0 = arith.constant 0 : i32
    %c0_i32_1 = arith.constant 0 : i32
    return %c0_i32, %c0_i32_0 : i32, i32
  }
  func.func @transform_2(%arg0: i32, %arg1: memref<6xi32, #tpu.memory_space<smem>>) -> (i32, i32) {
    %c0_i32 = arith.constant 0 : i32
    %c0_i32_0 = arith.constant 0 : i32
    %c0_i32_1 = arith.constant 0 : i32
    return %c0_i32, %c0_i32_0 : i32, i32
  }
  func.func @transform_3(%arg0: i32, %arg1: memref<6xi32, #tpu.memory_space<smem>>) -> (i32, i32) {
    %c0_i32 = arith.constant 0 : i32
    %c0_i32_0 = arith.constant 0 : i32
    %c0_i32_1 = arith.constant 0 : i32
    return %c0_i32, %c0_i32_0 : i32, i32
  }
  func.func @transform_4(%arg0: i32, %arg1: memref<6xi32, #tpu.memory_space<smem>>) -> (i32, i32) {
    %c0_i32 = arith.constant 0 : i32
    %c0_i32_0 = arith.constant 0 : i32
    %c0_i32_1 = arith.constant 0 : i32
    return %c0_i32, %c0_i32_0 : i32, i32
  }
  func.func @transform_5(%arg0: i32, %arg1: memref<6xi32, #tpu.memory_space<smem>>) -> (i32, i32) {
    %c0_i32 = arith.constant 0 : i32
    %c0_i32_0 = arith.constant 0 : i32
    %c0_i32_1 = arith.constant 0 : i32
    return %c0_i32, %c0_i32_0 : i32, i32
  }
  func.func @transform_6(%arg0: i32, %arg1: memref<6xi32, #tpu.memory_space<smem>>) -> (i32, i32) {
    %c0_i32 = arith.constant 0 : i32
    %c0_i32_0 = arith.constant 0 : i32
    %c0_i32_1 = arith.constant 0 : i32
    return %c0_i32, %c0_i32_0 : i32, i32
  }
  func.func @transform_7(%arg0: i32, %arg1: memref<6xi32, #tpu.memory_space<smem>>) -> (i32, i32) {
    %c0_i32 = arith.constant 0 : i32
    %c0_i32_0 = arith.constant 0 : i32
    %c0_i32_1 = arith.constant 0 : i32
    return %c0_i32, %c0_i32_0 : i32, i32
  }
  func.func @transform_8(%arg0: i32, %arg1: memref<6xi32, #tpu.memory_space<smem>>) -> (i32, i32) {
    %c0_i32 = arith.constant 0 : i32
    %c0_i32_0 = arith.constant 0 : i32
    %c0_i32_1 = arith.constant 0 : i32
    return %c0_i32, %c0_i32_0 : i32, i32
  }
  func.func @transform_9(%arg0: i32, %arg1: memref<6xi32, #tpu.memory_space<smem>>) -> (i32, i32) {
    %c0_i32 = arith.constant 0 : i32
    %c0_i32_0 = arith.constant 0 : i32
    %c0_i32_1 = arith.constant 0 : i32
    return %c0_i32, %c0_i32_0 : i32, i32
  }
  func.func @transform_10(%arg0: i32, %arg1: memref<6xi32, #tpu.memory_space<smem>>) -> (i32, i32) {
    %c0_i32 = arith.constant 0 : i32
    %c0_i32_0 = arith.constant 0 : i32
    %c0_i32_1 = arith.constant 0 : i32
    return %c0_i32, %c0_i32_0 : i32, i32
  }
  func.func @transform_11(%arg0: i32, %arg1: memref<6xi32, #tpu.memory_space<smem>>) -> (i32, i32) {
    %c0_i32 = arith.constant 0 : i32
    %c0_i32_0 = arith.constant 0 : i32
    %c0_i32_1 = arith.constant 0 : i32
    return %c0_i32, %c0_i32_0 : i32, i32
  }
  func.func @transform_12(%arg0: i32, %arg1: memref<6xi32, #tpu.memory_space<smem>>) -> (i32, i32, i32) {
    %c0_i32 = arith.constant 0 : i32
    %c0_i32_0 = arith.constant 0 : i32
    %c0_i32_1 = arith.constant 0 : i32
    return %arg0, %c0_i32, %c0_i32_0 : i32, i32, i32
  }
}

</mosaic_0001>

<bundles_post_ra>
// kernel: tpu_custom_call.1
= control target key start
LH: loop header
LB: loop body
LE: loop exit
PB: predicated region body
PF: predicated region fallthrough
CT: control target
= control target key end

     0   :  { %s1866_s0 = inlined_call_operand.vmem [shape: s32[6], index: 0, kind: input, shape index: {}]   ;;  %s1867_s1 = inlined_call_operand.vmem [shape: f32[64,32], index: 1, kind: input, shape index: {}]   ;;  %s1868_s2 = inlined_call_operand.vmem [shape: f32[1,32], index: 2, kind: input, shape index: {}]   ;;  %s1869_s3 = inlined_call_operand.vmem [shape: f32[128,32], index: 3, kind: input, shape index: {}]   ;;  %s1870_s4 = inlined_call_operand.vmem [shape: f32[64,256], index: 4, kind: input, shape index: {}]   ;;  %s1871_s5 = inlined_call_operand.vmem [shape: f32[1,128], index: 5, kind: input, shape index: {}]   ;;  %s1872_s6 = inlined_call_operand.vmem [shape: f32[32,32], index: 6, kind: input, shape index: {}]   ;;  %s1873_s7 = inlined_call_operand.vmem [shape: f32[1,32], index: 7, kind: input, shape index: {}]   ;;  %s1874_s8 = inlined_call_operand.vmem [shape: f32[32,96], index: 8, kind: input, shape index: {}]   ;;  %s1875_s9 = inlined_call_operand.vmem [shape: f32[1,96], index: 9, kind: input, shape index: {}]   ;;  %s1876_s10 = inlined_call_operand.vmem [shape: f32[1,96], index: 10, kind: input, shape index: {}]   ;;  %s1877_s11 = inlined_call_operand.vmem [shape: f32[32,128], index: 11, kind: input, shape index: {}]   ;;  %s1878_s12 = inlined_call_operand.vmem [shape: f32[1,128], index: 12, kind: input, shape index: {}]   ;;  %s1879_s13 = inlined_call_operand.hbm [shape: f32[6,1,384], index: 13, kind: output, shape index: {}]  }
   0x1   :  { %1884 = sst [smem:[#allocation11_spill]] %s1868_s2  ;;  %s18_s27 = sshll.u32 %s1866_s0, 4  ;;  %s19_s27 = int_to_ptr.vmem [resolvable:$true] %s18_s27 }
   0x2   :  { %s1361_s28 = scalar_lea.vmem %s19_s27, 16  ;;  %p1366_p1 = scmp.lt.s32.totalorder %s19_s27, %s19_s27 }
   0x3   :  { %p1362_p0 = scmp.ne.s32.totalorder %s19_s27, %s1361_s28  ;;  %p1367_p2 = scmp.lt.s32.totalorder %s1361_s28, %s1361_s28 }
   0x5   :  { %p1368_p3 = por %p1367_p2, %p1366_p1 }
   0x7   :  { %p1369_p4 = pnand %p1368_p3, %p1362_p0 }
   0x9   :  { %1372 = shalt.err (!%p1369_p4)  }
   0xa   :  { %s1439_s29 = smov [#allocation4]  }
   0xb   :  { %21 = dma.vmem_to_smem %s19_s27, 16, %s1439_s29, [#allocation3] }
   0xc   :  { %1417 = dma.done.wait [#allocation3], 16 }
   0xd   :  { %1418 = vsyncadd [#allocation3], 4294967280 }
   0xe   :  { %23 = sfence }
   0xf   :  { %24 = vsyncpa [#allocation6], 0 }
  0x10   :  { %26 = vsyncpa [#allocation6 + $0x1], 0  ;;  %s1521_s30 = smov 0   ;;  %s1523_s14 = smov 0  }
  0x11   :  { %s1525_s0 = smov 0   ;;  %s1527_s15 = smov 0  }
  0x12 LB: > { %1885 = sst [smem:[#allocation9_spill]] %s1433_s0  ;;  %s1542_s16 = sadd.s32 4294967295, %s1437_s15   ;;  %s1437_s15 = sphi %s1527_s15, %s1898_s15   ;;  %s1433_s0 = sphi %s1525_s0, %s1895_s0   ;;  %s1429_s14 = sphi %s1523_s14, %s1897_s14   ;;  %s1425_s30 = sphi %s1521_s30, %s1896_s30  }
  0x13   : > { %s1084_s17 = sadd.s32 4294967294, %s1437_s15   ;;  %s1546_s18 = sadd.s32 1, %s1437_s15  }
  0x14   : > { %s291_s19 = sadd.s32 1, %s1433_s0  ;;  %s288_s20 = ssub.s32 %s1437_s15, %s1546_s18 }
  0x15   : > { %p301_p5 = scmp.ne.s32.totalorder %s1433_s0, %s1429_s14  ;;  %p289_p6 = scmp.eq.s32.totalorder %s288_s20, 0 }
  0x16   : > { %p302_p7 = scmp.eq.s32.totalorder %s1542_s16, 5  ;;  %p307_p8 = scmp.ne.s32.totalorder %s1429_s14, %s1425_s30 }
  0x17   : > { %p308_p9 = scmp.eq.s32.totalorder %s1084_s17, 5  ;;  %p1086_p12 = scmp.ge.s32.totalorder %s1437_s15, 1 }
  0x18   : > { %s1557_s21 = scalar_select %p289_p6, %s1433_s0, %s291_s19  }
  0x19   : > { %p1559_p10 = por %p302_p7, %p301_p5  ;;  %p1563_p11 = por %p308_p9, %p307_p8 }
  0x1a   : > { %1886 = sst [smem:[#allocation10_spill]] %s1557_s21  ;;  %p362_p13 = scmp.lt.s32.totalorder %s1437_s15, 7 }
  0x1c   : > { %p363_p0 = pnand %p1086_p12, %p362_p13 }
  0x1d   : > { %s1880_s24 = sand.u32 (!%p363_p0), 1, %s1429_s14   ;;  %p1087_p1 = scmp.ne.s32.totalorder (!%p363_p0), %s1542_s16, 0 }
  0x1e   : > { %366 = sbr.rel (%p363_p0) target bundleno = 2392 (0x958), region = 68 }
  0x1f   : > { %s1572_s25 = smul.u32 (!%p363_p0), 3, %s1880_s24 }
  0x25   : > { %402 = sbr.rel (%p1087_p1) target bundleno = 45 (0x2d), region = 72  ;;  %s1889_s2 = sld [smem:[#allocation11_spill]] (!%p1087_p1)  ;;  %vm404_vm0 = vcmask (!%p1087_p1), 253952  }
  0x2b   : > { %v403_v0 = vld [vmem:[%s1889_s2] sm:$0x1] (!%p1087_p1) }
  0x2c   : > { %405 = vst.msk [vmem:[#allocation2] sm:$0x1] %vm404_vm0, %v403_v0 }
  0x2d PF: > { %v414_v1 = vld [vmem:[%s1867_s1] sm:$0xff]  ;;  %v415_v2 = vld [vmem:[%s1867_s1 + $0x8] sm:$0xff]  ;;  %v416_v3 = vld [vmem:[%s1867_s1 + $0x10] sm:$0xff]  ;;  %v1440_v4 = vmov 0.0|0.0   ;;  %vm1441_vm1 = vmmov 0   ;;  %v1442_v7 = vmov 0.0   ;;  %v408_v15 = vlaneseq }
  0x2e   : > { %1228 = vmatprep.subr.bf16.mxu0 %v1440_v4  ;;  %v1229_v5 = vpack.c.bf16 %v415_v2, %v414_v1  ;;  %v417_v6 = vld [vmem:[%s1867_s1 + $0x18] sm:$0xff]  ;;  %1157 = vmatprep.mubr.msk.f32.mxu0 %vm1441_vm1, %v1442_v7  ;;  %s1595_s29 = sld [smem:[#allocation4 + %s1542_s16]]  ;;  %v418_v8 = vld [vmem:[%s1867_s1 + $0x20] sm:$0xff]  ;;  %v419_v9 = vld [vmem:[%s1867_s1 + $0x28] sm:$0xff]  ;;  %s1881_s20 = smov 32   ;;  %vm422_vm3 = vcmask 523264  }
  0x2f   : > { %589 = vmatprep.mubr.f32.mxu1 %v1442_v7  ;;  %v1232_v11 = vpack.c.bf16 %v417_v6, %v416_v3  ;;  %v507_v12 = vld [vmem:[%s1870_s4 + $0x8] sm:$0xff]  ;;  %v509_v13 = vld [vmem:[%s1870_s4 + $0x18] sm:$0xff]  ;;  %v506_v14 = vld [vmem:[%s1870_s4] sm:$0xff]  ;;  %v1235_v26 = vpack.c.bf16 %v419_v9, %v418_v8  ;;  %v409_v30 = vand.u32 127, %v408_v15  ;;  %vm504_vm4 = vcmask 261120   ;;  %s1890_s28 = smov 32  }
  0x30   : > { %1230 = vmatpush3.bf16.msra.mxu0 %v1229_v5  ;;  %v1240_v16 = vpack.c.bf16 %v509_v13, %v507_v12  ;;  %v508_v17 = vld [vmem:[%s1870_s4 + $0x10] sm:$0xff]  ;;  %v511_v18 = vld [vmem:[%s1870_s4 + $0x28] sm:$0xff]  ;;  %v513_v19 = vld [vmem:[%s1870_s4 + $0x38] sm:$0xff]  ;;  %vm598_vm5 = vcmask 1040384   ;;  %s1444_s26 = smov 96   ;;  %s1445_s27 = smov 64  }
  0x31   : > { %1231 = vmatprep.subr.bf16.mxu0 %v1440_v4  ;;  %v1242_v20 = vpack.c.bf16 %v508_v17, %v506_v14  ;;  %v1244_v21 = vpack.c.bf16 %v513_v19, %v511_v18  ;;  %v510_v22 = vld [vmem:[%s1870_s4 + $0x20] sm:$0xff]  ;;  %v512_v23 = vld [vmem:[%s1870_s4 + $0x30] sm:$0xff]  ;;  %v515_v24 = vld [vmem:[%s1870_s4 + $0x48] sm:$0xff]  ;;  %vm898_vm6 = vcmask 253952   ;;  %s1891_s2 = scalar_lea.vmem [#allocation5], %s1572_s25  ;;  %vm1019_vm7 = vcmp.lt.s32.totalorder %v408_v15, 384 }
  0x32   : > { %1241 = vmatprep.subr.bf16.mxu1 %v1240_v16  ;;  %v517_v25 = vld [vmem:[%s1870_s4 + $0x58] sm:$0xff]  ;;  %v420_v27 = vld [vmem:[%s1867_s1 + $0x30] sm:$0xff]  ;;  %v1246_v28 = vpack.c.bf16 %v512_v23, %v510_v22  ;;  %v514_v32 = vld [vmem:[%s1870_s4 + $0x40] sm:$0xff]  ;;  %s1892_s19 = smov %s1891_s2  ;;  %s1893_s24 = sand.u32 1, %s1429_s14  }
  0x33   : > { %v1090_v10 = vld [vmem:[#allocation2] ss:$0 sm:$0xff]  ;;  %1243 = vmatpush1.bf16.msra.mxu1 %v1242_v20  ;;  %v421_v29 = vld [vmem:[%s1867_s1 + $0x38] sm:$0xff]  ;;  %v1248_v31 = vpack.c.bf16 %v517_v25, %v515_v24  ;;  %v516_v33 = vld [vmem:[%s1870_s4 + $0x50] sm:$0xff] }
  0x34   : > { %501 = vrot.lane.b32.xlu0 %v1090_v10, %s1881_s20  ;;  %1233 = vmatpush3.bf16.msra.mxu0 %v1232_v11  ;;  %v410_v34 = vstv %s1595_s29  ;;  %v519_v35 = vld [vmem:[%s1870_s4 + $0x68] sm:$0xff]  ;;  %v521_v36 = vld [vmem:[%s1870_s4 + $0x78] sm:$0xff]  ;;  %v1238_v37 = vpack.c.bf16 %v421_v29, %v420_v27  ;;  %v1250_v38 = vpack.c.bf16 %v516_v33, %v514_v32  ;;  %s1447_s20 = smov [#allocation5]  }
  0x35   : > { %1234 = vmatprep.subr.bf16.mxu0 %v1440_v4  ;;  %1245 = vmatprep.subr.bf16.mxu1 %v1244_v21  ;;  %vm411_vm2 = vcmp.eq.s32.totalorder %v409_v30, %v410_v34  ;;  %v1252_v39 = vpack.c.bf16 %v521_v36, %v519_v35  ;;  %v518_v40 = vld [vmem:[%s1870_s4 + $0x60] sm:$0xff]  ;;  %v520_v41 = vld [vmem:[%s1870_s4 + $0x70] sm:$0xff]  ;;  %v611_v54 = vld [vmem:[%s1869_s3 + $0x8] sm:$0xff] }
  0x36   : > { %v1088_v42 = vsel %vm411_vm2, 1.0, %v1442_v7  ;;  %v1254_v43 = vpack.c.bf16 %v520_v41, %v518_v40  ;;  %v596_v48 = vld [vmem:[%s1871_s5] sm:$0x1]  ;;  %v612_v55 = vld [vmem:[%s1869_s3 + $0x10] sm:$0xff]  ;;  %v613_v57 = vld [vmem:[%s1869_s3 + $0x18] sm:$0xff] }
  0x37   : > { %1247 = vmatpush1.bf16.msra.mxu1 %v1246_v28  ;;  %v610_v53 = vld [vmem:[%s1869_s3] sm:$0xff]  ;;  %v1260_v58 = vpack.c.bf16 %v613_v57, %v612_v55  ;;  %v615_v60 = vld [vmem:[%s1869_s3 + $0x28] sm:$0xff]  ;;  %v616_v62 = vld [vmem:[%s1869_s3 + $0x30] sm:$0xff] }
  0x38   : > { %1236 = vmatpush3.bf16.msra.mxu0 %v1235_v26  ;;  %1249 = vmatprep.subr.bf16.mxu1 %v1248_v31  ;;  %v1257_v56 = vpack.c.bf16 %v611_v54, %v610_v53  ;;  %v614_v59 = vld [vmem:[%s1869_s3 + $0x20] sm:$0xff]  ;;  %v617_v63 = vld [vmem:[%s1869_s3 + $0x38] sm:$0xff]  ;;  %v619_v2 = vld [vmem:[%s1869_s3 + $0x48] sm:$0xff] }
  0x39   : > { %1237 = vmatprep.subr.bf16.mxu0 %v1440_v4  ;;  %v1263_v61 = vpack.c.bf16 %v615_v60, %v614_v59  ;;  %v1266_v0 = vpack.c.bf16 %v617_v63, %v616_v62  ;;  %v618_v1 = vld [vmem:[%s1869_s3 + $0x40] sm:$0xff]  ;;  %v620_v11 = vld [vmem:[%s1869_s3 + $0x50] sm:$0xff]  ;;  %v621_v12 = vld [vmem:[%s1869_s3 + $0x58] sm:$0xff] }
  0x3a   : > { %v1269_v3 = vpack.c.bf16 %v619_v2, %v618_v1  ;;  %v1094_v13 = vld [vmem:[%s1876_s10] ss:$0 sm:$0xff]  ;;  %v1272_v14 = vpack.c.bf16 %v621_v12, %v620_v11  ;;  %v623_v17 = vld [vmem:[%s1869_s3 + $0x68] sm:$0xff]  ;;  %v624_v19 = vld [vmem:[%s1869_s3 + $0x70] sm:$0xff] }
  0x3b   : > { %1251 = vmatpush1.bf16.msra.mxu1 %v1250_v38  ;;  %v622_v16 = vld [vmem:[%s1869_s3 + $0x60] sm:$0xff]  ;;  %v625_v20 = vld [vmem:[%s1869_s3 + $0x78] sm:$0xff]  ;;  %v697_v23 = vld [vmem:[%s1872_s6 + $0x8] sm:$0xff] }
  0x3c   : > { %1239 = vmatpush3.bf16.msra.mxu0 %v1238_v37  ;;  %1253 = vmatprep.subr.bf16.mxu1 %v1252_v39  ;;  %v1275_v18 = vpack.c.bf16 %v623_v17, %v622_v16  ;;  %v1278_v21 = vpack.c.bf16 %v625_v20, %v624_v19  ;;  %v696_v22 = vld [vmem:[%s1872_s6] sm:$0xff]  ;;  %v698_v24 = vld [vmem:[%s1872_s6 + $0x10] sm:$0xff]  ;;  %v699_v26 = vld [vmem:[%s1872_s6 + $0x18] sm:$0xff] }
  0x3d   : > { %1256 = vmatprep.subr.bf16.mxu0 %v1440_v4  ;;  %v1281_v25 = vpack.c.bf16 %v697_v23, %v696_v22  ;;  %v1284_v28 = vpack.c.bf16 %v699_v26, %v698_v24  ;;  %v777_v35 = vld [vmem:[%s1874_s8] sm:$0xff]  ;;  %v778_v36 = vld [vmem:[%s1874_s8 + $0x8] sm:$0xff]  ;;  %v779_v38 = vld [vmem:[%s1874_s8 + $0x10] sm:$0xff]  ;;  %v1446_v22 = vmov 1966171168  }
  0x3e   : > { %v1287_v37 = vpack.c.bf16 %v778_v36, %v777_v35  ;;  %v780_v39 = vld [vmem:[%s1874_s8 + $0x18] sm:$0xff]  ;;  %v901_v62 = vld [vmem:[%s1877_s11 + $0x8] sm:$0xff]  ;;  %v902_v63 = vld [vmem:[%s1877_s11 + $0x10] sm:$0xff]  ;;  %v995_v23 = vunpack.c.l.s4 %v1446_v22 }
  0x3f   : > { %1158 = vmatmul.mubr.msk.f32.vlgmr.msra.gmra.mrb[0].mxu0 %vm422_vm3, %v1088_v42  ;;  %1255 = vmatpush1.bf16.msra.mxu1 %v1254_v43  ;;  %v1290_v40 = vpack.c.bf16 %v780_v39, %v779_v38  ;;  %v774_v42 = vld [vmem:[%s1873_s7] sm:$0x1]  ;;  %v903_v1 = vld [vmem:[%s1877_s11 + $0x18] sm:$0xff] }
  0x40   : > { %1192 = vmatprep.mubr.msk.f32.mxu0 %vm1441_vm1, %v1442_v7  ;;  %1280 = vmatprep.subr.bf16.mxu1 %v1440_v4  ;;  %v1296_v2 = vpack.c.bf16 %v903_v1, %v902_v63  ;;  %v996_v24 = vunpack.c.0.s8 %v995_v23 }
  0x41   : > { %1258 = vmatpush3.bf16.msra.mxu0 %v1257_v56 }
  0x42   : > { %1259 = vmatprep.subr.bf16.mxu0 %v1440_v4 }
  0x45   : > { %1261 = vmatpush3.bf16.msra.mxu0 %v1260_v58 }
  0x46   : > { %1262 = vmatprep.subr.bf16.mxu0 %v1440_v4 }
  0x49   : > { %1264 = vmatpush3.bf16.msra.mxu0 %v1263_v61  ;;  %v900_v61 = vld [vmem:[%s1877_s11] sm:$0xff] }
  0x4a   : > { %1265 = vmatprep.subr.bf16.mxu0 %v1440_v4 }
  0x4d   : > { %1267 = vmatpush3.bf16.msra.mxu0 %v1266_v0  ;;  %v1293_v0 = vpack.c.bf16 %v901_v62, %v900_v61 }
  0x4e   : > { %1268 = vmatprep.subr.bf16.mxu0 %v1440_v4 }
  0x51   : > { %1270 = vmatpush3.bf16.msra.mxu0 %v1269_v3 }
  0x52   : > { %1271 = vmatprep.subr.bf16.mxu0 %v1440_v4 }
  0x55   : > { %1273 = vmatpush3.bf16.msra.mxu0 %v1272_v14 }
  0x56   : > { %1274 = vmatprep.subr.bf16.mxu0 %v1440_v4 }
  0x59   : > { %1276 = vmatpush3.bf16.msra.mxu0 %v1275_v18 }
  0x5a   : > { %1277 = vmatprep.subr.bf16.mxu0 %v1440_v4 }
  0x5d   : > { %1279 = vmatpush3.bf16.msra.mxu0 %v1278_v21 }
  0xa6   : > { %v1669_v44 = vpop.permute.xlu0 %501 }
 0x112   : > { %v492_v45 = vpop.f32.mrb[0].mxu0 }
 0x113   : > { %v505_v46 = vsel %vm504_vm4, %v492_v45, %v1669_v44  ;;  %v1159_v47 = vpop.f32.mrb[1].mxu0 }
 0x114   : > { %1091 = vmatmul.mubr.msk.f32.vlgmr.msra.gmra.mrb[0].mxu1 %vm422_vm3, %v505_v46 }
 0x115   : > { %1203 = vmatprep.mubr.msk.f32.mxu1 %vm1441_vm1, %v1442_v7  ;;  %1282 = vmatpush3.bf16.msra.mxu1 %v1281_v25  ;;  %v998_v25 = vshrl.u32 %v408_v15, 7 }
 0x116   : > { %1283 = vmatprep.subr.bf16.mxu1 %v1440_v4 }
 0x119   : > { %1285 = vmatpush3.bf16.msra.mxu1 %v1284_v28  ;;  %v999_v28 = vsub.s32 %v996_v24, %v998_v25 }
 0x11a   : > { %1286 = vmatprep.subr.bf16.mxu1 %v1440_v4 }
 0x1e7   : > { %v591_v49 = vpop.f32.mrb[0].mxu1 }
 0x1e8   : > { %v597_v50 = vadd.f32 %v596_v48, %v591_v49  ;;  %v1678_v51 = vpop.f32.mrb[1].mxu1  ;;  %v781_v48 = vld [vmem:[%s1875_s9] sm:$0x1] }
 0x1ea   : > { %v599_v52 = vsel %vm598_vm5, %v597_v50, -inf }
 0x1eb   : > { %600 = vmax.xlane.f32.xlu0 %v599_v52 }
 0x278   : > { %v601_v5 = vpop.xlane.xlu0 %600 }
 0x279   : > { %v602_v6 = vsub.f32 %v597_v50, %v601_v5 }
 0x27b   : > { %v603_v8 = vmul.f32 1.442695, %v602_v6 }
 0x27d   : > { %1347 = vpow2.f32 %v603_v8 }
 0x287   : > { %v1348_v9 = vpop.eup %1347 }
 0x288   : > { %v605_v10 = vsel %vm598_vm5, %v1348_v9, 0.0 }
 0x289   : > { %606 = vadd.xlane.f32.xlu1 %v605_v10 }
 0x29a   : > { %861 = vrot.lane.b32.xlu1 %v1094_v13, %s1890_s28 }
 0x316   : > { %v607_v27 = vpop.xlane.xlu1 %606 }
 0x317   : > { %1349 = vrcp.f32 %v607_v27 }
 0x31a   : > { %v862_v29 = vpop.permute.xlu1 %861 }
 0x31b   : > { %v864_v30 = vadd.f32 %v862_v29, %v1678_v51 }
 0x31d   : > { %866 = vrot.lane.b32.xlu1 %v864_v30, %s1444_s26 }
 0x321   : > { %v1350_v31 = vpop.eup %1349  ;;  %876 = vrot.lane.b32.xlu1 %v864_v30, %s1890_s28  ;;  %s1037_s28 = sshll.u32 %s1891_s2, 4  ;;  %s1822_s28 = int_to_ptr.vmem [resolvable:$true] %s1037_s28 }
 0x322   : > { %v1758_v32 = vmul.f32 %v1350_v31, %v1348_v9  ;;  %s1373_s0 = scalar_lea.vmem %s1822_s28, 48 }
 0x323   : > { %p1374_p2 = scmp.ne.s32.totalorder %s1822_s28, %s1373_s0 }
 0x324   : > { %1193 = vmatmul.mubr.f32.vlgmr.msra.gmra.mrb[2].mxu0 %v1758_v32 }
 0x325   : > { %p1375_p3 = pnand %p1374_p2, %p1559_p10 }
 0x327   : > { %p1376_p4 = pneg %p1375_p3 }
 0x38f   : > { %v867_v53 = vpop.permute.xlu1 %866 }
 0x393   : > { %v877_v58 = vpop.permute.xlu1 %876 }
 0x3f7   : > { %v692_v33 = vpop.f32.mrb[2].mxu0 }
 0x3f8   : > { %v1194_v34 = vpop.f32.mrb[3].mxu0  ;;  %1204 = vmatmul.mubr.msk.f32.vlgmr.msra.gmra.mrb[2].mxu1 %vm504_vm4, %v692_v33 }
 0x3f9   : > { %1214 = vmatprep.mubr.msk.f32.mxu1 %vm1441_vm1, %v1442_v7  ;;  %1288 = vmatpush3.bf16.msra.mxu1 %v1287_v37 }
 0x3fa   : > { %1289 = vmatprep.subr.bf16.mxu1 %v1440_v4 }
 0x3fd   : > { %1291 = vmatpush3.bf16.msra.mxu1 %v1290_v40 }
 0x3fe   : > { %1292 = vmatprep.subr.bf16.mxu1 %v1440_v4 }
 0x4cb   : > { %v769_v41 = vpop.f32.mrb[2].mxu1 }
 0x4cc   : > { %v773_v43 = vadd.f32 %v769_v41, %v1678_v51  ;;  %v1205_v45 = vpop.f32.mrb[3].mxu1 }
 0x4ce   : > { %v775_v46 = vadd.f32 %v774_v42, %v773_v43 }
 0x4d0   : > { %v776_v47 = vmax.f32 %v775_v46, 0.0 }
 0x4d2   : > { %1215 = vmatmul.mubr.msk.f32.vlgmr.msra.gmra.mrb[4].mxu1 %vm504_vm4, %v776_v47 }
 0x4d3   : > { %1225 = vmatprep.mubr.msk.f32.mxu1 %vm1441_vm1, %v1442_v7  ;;  %1294 = vmatpush3.bf16.msra.mxu1 %v1293_v0 }
 0x4d4   : > { %1295 = vmatprep.subr.bf16.mxu1 %v1440_v4  ;;  %v904_v4 = vld [vmem:[%s1878_s12] sm:$0x1] }
 0x4d7   : > { %1297 = vmatpush3.bf16.msra.mxu1 %v1296_v2 }
 0x5a5   : > { %v851_v49 = vpop.f32.mrb[4].mxu1 }
 0x5a6   : > { %v852_v50 = vadd.f32 %v851_v49, %v781_v48  ;;  %v1216_v52 = vpop.f32.mrb[5].mxu1 }
 0x5a8   : > { %v869_v54 = vadd.f32 %v867_v53, %v852_v50 }
 0x5aa   : > { %v1095_v55 = vmul.f32 -1.442695, %v869_v54 }
 0x5ac   : > { %1351 = vpow2.f32 %v1095_v55 }
 0x5b6   : > { %v1352_v51 = vpop.eup %1351 }
 0x5b7   : > { %v873_v56 = vadd.f32 1.0, %v1352_v51 }
 0x5b9   : > { %1353 = vrcp.f32 %v873_v56 }
 0x5c3   : > { %v1354_v57 = vpop.eup %1353 }
 0x5c4   : > { %v879_v59 = vmul.f32 %v1354_v57, %v877_v58  ;;  %v886_v5 = vsub.f32 1.0, %v1354_v57  ;;  %v892_v8 = vmul.f32 %v1354_v57, %v1669_v44 }
 0x5c6   : > { %881 = vrot.lane.b32.xlu1 %v879_v59, %s1445_s27  ;;  %s1377_s27 = sshll.u32 %s1447_s20, 4  ;;  %s1378_s27 = int_to_ptr.vmem [resolvable:$false] %s1377_s27 }
 0x5c7   : > { %s1379_s2 = scalar_lea.vmem %s1378_s27, 96  ;;  %p1380_p5 = scmp.lt.s32.totalorder %s1822_s28, %s1378_s27 }
 0x5c8   : > { %p1381_p6 = scmp.lt.s32.totalorder %s1379_s2, %s1373_s0 }
 0x5ca   : > { %p1382_p7 = por %p1381_p6, %p1380_p5 }
 0x5cc   : > { %p1383_p8 = pnand %p1382_p7, %p1376_p4 }
 0x638   : > { %v882_v7 = vpop.permute.xlu1 %881 }
 0x639   : > { %v884_v60 = vadd.f32 %v882_v7, %v852_v50 }
 0x63b   : > { %1355 = vtanh.f32 %v884_v60 }
 0x645   : > { %v1356_v3 = vpop.eup %1355 }
 0x646   : > { %888 = vrot.lane.b32.xlu1 %v1356_v3, %s1444_s26 }
 0x6b8   : > { %v889_v6 = vpop.permute.xlu1 %888 }
 0x6b9   : > { %v891_v9 = vmul.f32 %v889_v6, %v886_v5 }
 0x6bb   : > { %v893_v10 = vadd.f32 %v892_v8, %v891_v9 }
 0x6bd   : > { %895 = vrot.lane.b32.xlu0 %v893_v10, %s1444_s26  ;;  %s1299_s26 = smul.u32 48, %s1542_s16  ;;  %s1023_s16 = scalar_lea.sflag [#allocation6], %s1893_s24 }
 0x6bf   : > { %s1820_s17 = scalar_lea.hbm %s1879_s13, %s1299_s26 }
 0x72f   : > { %v896_v11 = vpop.permute.xlu0 %895 }
 0x730   : > { %899 = vst.msk [vmem:[#allocation2] sm:$0x1] %vm898_vm6, %v896_v11  ;;  %1226 = vmatmul.mubr.msk.f32.vlgmr.msra.gmra.mrb[6].mxu1 %vm504_vm4, %v896_v11  ;;  %v989_v30 = vsel %vm504_vm4, %v896_v11, 0.0 }
 0x731   : > { %v1007_v33 = vrot.slane %v989_v30, %v999_v28 }
 0x803   : > { %v973_v12 = vpop.f32.mrb[6].mxu1 }
 0x804   : > { %v974_v13 = vadd.f32 %v973_v12, %v904_v4  ;;  %v1227_v14 = vpop.f32.mrb[7].mxu1 }
 0x806   : > { %v977_v16 = vsel %vm598_vm5, %v974_v13, -inf }
 0x807   : > { %978 = vmax.xlane.f32.xlu1 %v977_v16 }
 0x894   : > { %v979_v44 = vpop.xlane.xlu1 %978 }
 0x895   : > { %v980_v17 = vsub.f32 %v974_v13, %v979_v44 }
 0x897   : > { %v981_v18 = vmul.f32 1.442695, %v980_v17 }
 0x899   : > { %1357 = vpow2.f32 %v981_v18 }
 0x8a3   : > { %v1358_v19 = vpop.eup %1357 }
 0x8a4   : > { %v983_v20 = vsel %vm598_vm5, %v1358_v19, 0.0 }
 0x8a5   : > { %984 = vadd.xlane.f32.xlu0 %v983_v20 }
 0x932   : > { %v985_v21 = vpop.xlane.xlu0 %984 }
 0x933   : > { %1359 = vlog2.f32 %v985_v21 }
 0x93d   : > { %v1360_v26 = vpop.eup %1359 }
 0x93e   : > { %v987_v27 = vmul.f32 0.6931472, %v1360_v26 }
 0x940   : > { %v988_v29 = vsub.f32 %v980_v17, %v987_v27 }
 0x942   : > { %v993_v31 = vcombine.low %v988_v29, %v1758_v32 }
 0x944   : > { %v1000_v34 = vrot.slane %v993_v31, %v999_v28 }
 0x946   : > { %v1008_v35 = vcombine.low %v1000_v34, %v1007_v33 }
 0x948   : > { %v1015_v36 = vrot.slane %v1008_v35, %v999_v28 }
 0x94a   : > { %1021 = vst.msk [vmem:[%s1892_s19] sm:$0x7] %vm1019_vm7, %v1015_v36 }
 0x94b   : > { %1386 = shalt.err (!%p1383_p8)
}
 0x94c   : > { %s1387_s25 = scalar_lea.hbm %s1820_s17, 48  ;;  %s1391_s29 = scalar_lea.hbm %s1879_s13, 288 }
 0x94d   : > { %p1388_p9 = scmp.ne.s32.totalorder %s1820_s17, %s1387_s25  ;;  %p1392_p0 = scmp.lt.u32.totalorder %s1820_s17, %s1879_s13 }
 0x94e   : > { %p1393_p1 = scmp.lt.u32.totalorder %s1391_s29, %s1387_s25  ;;  %p1395_p3 = scmp.lt.u32.totalorder %s1387_s25, %s1820_s17 }
 0x94f   : > { %p1389_p12 = pnand %p1388_p9, %p1559_p10 }
 0x950   : > { %p1394_p2 = por %p1393_p1, %p1392_p0 }
 0x951   : > { %p1390_p13 = pneg %p1389_p12 }
 0x952   : > { %p1396_p4 = por %p1395_p3, %p1394_p2 }
 0x954   : > { %p1397_p5 = pnand %p1396_p4, %p1390_p13 }
 0x956   : > { %1400 = shalt.err (!%p1397_p5)
}
 0x957   : > { %1300 = dma.vmem_to_hbm [thread:$0]  (%p1559_p10), %s1822_s28, 48, %s1820_s17, %s1023_s16  }
 0x958 PF: > { %p1306_p6 = scmp.ge.s32.totalorder %s1437_s15, 2  ;;  %s1049_s0 = sand.u32 1, %s1425_s30  }
 0x959   : > { %s1050_s20 = scalar_lea.sflag [#allocation6], %s1049_s0 }
 0x95a   : > { %p1303_p7 = pnand %p1306_p6, %p1563_p11 }
 0x95c   : > { %1420 = dma.done.wait (!%p1303_p7), %s1050_s20, 48  }
 0x95d   : > { %1422 = vsyncadd (!%p1303_p7), %s1050_s20, 4294967248  ;;  %s1894_s27 = sld [smem:[#allocation9_spill]]  ;;  %s1895_s0 = sld [smem:[#allocation10_spill]] }
 0x95e   : > { %p29_p8 = scmp.ge.s32.totalorder %s1546_s18, 8   ;;  %s1896_s30 = smov %s1429_s14 }
 0x95f   : > { %s1898_s15 = smov %s1546_s18 }
 0x960   :  { %31 = sbr.rel (!%p29_p8) target bundleno = 18 (0x12), region = 104 }
 0x963   : > { %s1897_s14 = smov %s1894_s27 }
 0x967   :  { %1055 = vsyncpa [#allocation6], 1 }
 0x968   :  { %1057 = vsyncpa [#allocation6 + $0x1], 1 }

</bundles_post_ra>
